<compile_context>
chip_gen: v6e
topology: v6e:2x2x1
jax: 0.10.0
libtpu: 0.0.40
codegen_flags: <defaults>
</compile_context>

<pallas_src>
import functools

import jax
import jax.numpy as jnp
from jax.experimental import pallas as pl
from jax.experimental.pallas import tpu as pltpu


# ----------------------------------------------------------------------------
# Kernel 1: fused QKV projection.
# One [tr, dim] @ [dim, 3*dim] bf16 MXU matmul (f32 accumulate) per row tile,
# split into three bf16 outputs so the attention kernel only DMAs what it uses.
# The 1/sqrt(head_dim) score scale is already folded into wq/bq.
# ----------------------------------------------------------------------------
def qkv_proj_kernel(x_ref, wqkv_ref, bqkv_ref, q_ref, k_ref, v_ref, *, dim):
    qkv = (jnp.dot(x_ref[...], wqkv_ref[...], preferred_element_type=jnp.float32)
           + bqkv_ref[...])                                       # [tr, 3*dim] f32
    q_ref[...] = qkv[:, 0:dim].astype(jnp.bfloat16)
    k_ref[...] = qkv[:, dim:2 * dim].astype(jnp.bfloat16)
    v_ref[...] = qkv[:, 2 * dim:3 * dim].astype(jnp.bfloat16)


# ----------------------------------------------------------------------------
# Kernel 2: masked flash attention + fused output projection.
# grid = (dst_tiles [parallel], src_tiles [arbitrary]), online softmax over src.
# For an edge u -> v: score uses q[u], k[v]; the output row index is v.  So the
# dst tile supplies KEYS, the src tile supplies QUERIES and VALUES, and scores
# are produced already transposed: sT[v, u] = <q[u], k[v]> (softmax over lanes).
# ----------------------------------------------------------------------------
def attn_kernel(k_ref, q_ref, v_ref, adjt_ref, wo_ref, bo_ref, out_ref,
                m_sc, l_sc, acc_sc, *, num_heads, head_dim, slab_acc):
    s_idx = pl.program_id(1)

    @pl.when(s_idx == 0)
    def _init():
        m_sc[...] = jnp.full_like(m_sc, -1e30)
        l_sc[...] = jnp.zeros_like(l_sc)
        acc_sc[...] = jnp.zeros_like(acc_sc)

    # Edge mask for this (dst, src) tile: adjt[v, u] > 0  <=>  edge u -> v.
    # Only structure matters (matches DGL edge_softmax over graph edges); hoisted
    # out of the head loop.  One bool mask + one f32 additive mask per tile.
    mask = adjt_ref[...] > 0                                      # [TD, TS] bool
    neg = jnp.where(mask, 0.0, -1e30)                             # additive mask

    k_dst = k_ref[...]                                            # [TD, dim] bf16 (keys of dst rows)
    q_src = q_ref[...]                                            # [TS, dim] bf16 (scaled queries of src rows)
    v_src = v_ref[...]                                            # [TS, dim] bf16 (values of src rows)

    # Static head loop (num_heads is small).  Dynamic fori_loop slicing would need
    # non-128-aligned dynamic lane starts for small head_dim; temporaries per head
    # are already minimal (sT, p) so vreg pressure is low.
    for h in range(num_heads):
        sl = slice(h * head_dim, (h + 1) * head_dim)
        # sT[v, u] = <q_scaled[u], k[v]>  (bf16 MXU operands, f32 accumulation)
        sT = jax.lax.dot_general(
            k_dst[:, sl], q_src[:, sl],
            dimension_numbers=(((1,), (1,)), ((), ())),
            preferred_element_type=jnp.float32) + neg             # [TD, TS]

        # Online softmax along the last (lane) axis.
        m_prev = m_sc[h]                                          # [TD, 1]
        m_new = jnp.maximum(m_prev, jnp.max(sT, axis=-1, keepdims=True))
        alpha = jnp.exp(m_prev - m_new)
        # Multiplicative zeroing is required for fully-masked (0-indegree / padded)
        # rows -- do not rely on exp underflow alone.
        p = jnp.where(mask, jnp.exp(sT - m_new), 0.0)             # [TD, TS]
        l_sc[h] = alpha * l_sc[h] + jnp.sum(p, axis=-1, keepdims=True)
        pv = jnp.dot(p.astype(jnp.bfloat16), v_src[:, sl],
                     preferred_element_type=jnp.float32)          # [TD, hd]
        if slab_acc:
            acc_sc[:, sl] = alpha * acc_sc[:, sl] + pv
        else:
            acc_sc[h] = alpha * acc_sc[h] + pv
        m_sc[h] = m_new

    @pl.when(s_idx == pl.num_programs(1) - 1)
    def _finalize():
        if slab_acc:
            # Lane-dense accumulator slab: normalize in place, no concatenate.
            for h in range(num_heads):
                sl = slice(h * head_dim, (h + 1) * head_dim)
                l = l_sc[h]
                inv = pl.reciprocal(jnp.where(l > 0.0, l, 1.0), approx=True)
                acc_sc[:, sl] = acc_sc[:, sl] * inv
            normed = acc_sc[...]
        else:
            cols = []
            for h in range(num_heads):
                l = l_sc[h]
                inv = pl.reciprocal(jnp.where(l > 0.0, l, 1.0), approx=True)
                cols.append(acc_sc[h] * inv)
            normed = jnp.concatenate(cols, axis=-1)               # [TD, dim]
        # Single deferred output projection (bf16 MXU operands, f32 accumulate).
        out_ref[...] = (jnp.dot(normed.astype(jnp.bfloat16), wo_ref[...],
                                preferred_element_type=jnp.float32)
                        + bo_ref[...])
        # TODO(synk): training-mode dropout (pltpu.prng_*) not applied; eval mode only.


def _round_up(a, m):
    return ((a + m - 1) // m) * m


def transformer_attention(x, adj, params, num_heads):
    """adj[u, v] != 0 iff directed edge u -> v (DGL (src, dst) convention)."""
    N, dim = x.shape
    dim_out = params["wo"].shape[1]
    head_dim = dim // num_heads
    o_pad = _round_up(dim_out, 128)            # lane-dense output slab

    # Tiling.
    #  * Small graphs: single src tile, >= 2 dst tiles so both v7x TensorCores get
    #    work on the 'parallel' axis.  Tiles are multiples of 32 sublanes (legal for
    #    int8/bf16 packed layouts).
    #  * Large graphs: flash tiles sized well under the smallest-generation VMEM
    #    (v7x 64 MiB), explicit vmem_limit_bytes (also lifts v5e's 16 MiB default).
    if N <= 1024:
        n_pad = _round_up(N, 64)
        td = n_pad // 2
        ts = n_pad
        tr = n_pad
        vmem_limit = None
    else:
        td, ts = 512, 1024
        n_pad = _round_up(N, 1024)
        tr = 256
        vmem_limit = 64 * 1024 * 1024

    if n_pad != N:
        x = jnp.pad(x, ((0, n_pad - N), (0, 0)))
        adj = jnp.pad(adj, ((0, n_pad - N), (0, n_pad - N)))      # padded nodes: no edges

    x_bf = x.astype(jnp.bfloat16)

    # Fold the 1/sqrt(head_dim) score scale into the query projection (one-time
    # weight fold), fuse Q/K/V into one [dim, 3*dim] bf16 weight.
    scale = 1.0 / (head_dim ** 0.5)
    wqkv = jnp.concatenate(
        [params["wq"] * scale, params["wk"], params["wv"]], axis=1).astype(jnp.bfloat16)
    bqkv = jnp.concatenate(
        [params["bq"] * scale, params["bk"], params["bv"]], axis=1)          # f32

    # Edge-structure mask, transposed and stored as int8 (adj_t[v, u] = edge u -> v).
    # Thresholding with > 0 keeps DGL edge-structure semantics even for weighted adj.
    # TODO(synk): if the graph is static across calls, build adj_t once upstream.
    adj_t = (adj.T > 0).astype(jnp.int8)

    wo_p = jnp.pad(params["wo"], ((0, 0), (0, o_pad - dim_out))).astype(jnp.bfloat16)
    bo_p = jnp.pad(params["bo"], ((0, 0), (0, o_pad - dim_out)))             # f32

    # ---- kernel 1: fused QKV projection (bf16 out) ---------------------------
    q, k, v = pl.pallas_call(
        functools.partial(qkv_proj_kernel, dim=dim),
        out_shape=(jax.ShapeDtypeStruct((n_pad, dim), jnp.bfloat16),) * 3,
        grid_spec=pltpu.PrefetchScalarGridSpec(
            num_scalar_prefetch=0,
            grid=(n_pad // tr,),
            in_specs=[pl.BlockSpec((tr, dim), lambda i: (i, 0)),
                      pl.BlockSpec((dim, 3 * dim), lambda i: (0, 0)),
                      pl.BlockSpec((1, 3 * dim), lambda i: (0, 0))],
            out_specs=[pl.BlockSpec((tr, dim), lambda i: (i, 0))] * 3),
        compiler_params=pltpu.CompilerParams(dimension_semantics=("parallel",)),
    )(x_bf, wqkv, bqkv)

    # ---- kernel 2: masked flash attention + output projection ----------------
    slab_acc = (head_dim % 128 == 0)
    acc_spec = (pltpu.VMEM((td, dim), jnp.float32) if slab_acc
                else pltpu.VMEM((num_heads, td, head_dim), jnp.float32))
    kernel = functools.partial(attn_kernel, num_heads=num_heads,
                               head_dim=head_dim, slab_acc=slab_acc)
    out = pl.pallas_call(
        kernel,
        out_shape=jax.ShapeDtypeStruct((n_pad, o_pad), jnp.float32),
        grid_spec=pltpu.PrefetchScalarGridSpec(
            num_scalar_prefetch=0,
            grid=(n_pad // td, n_pad // ts),
            in_specs=[
                pl.BlockSpec((td, dim), lambda d, s: (d, 0)),     # K of dst rows
                pl.BlockSpec((ts, dim), lambda d, s: (s, 0)),     # Q of src rows (pre-scaled)
                pl.BlockSpec((ts, dim), lambda d, s: (s, 0)),     # V of src rows
                pl.BlockSpec((td, ts), lambda d, s: (d, s)),      # adj^T tile (int8)
                pl.BlockSpec((dim, o_pad), lambda d, s: (0, 0)),  # Wo (bf16, padded)
                pl.BlockSpec((1, o_pad), lambda d, s: (0, 0)),    # bo (f32, padded)
            ],
            out_specs=pl.BlockSpec((td, o_pad), lambda d, s: (d, 0)),  # resident along src
            scratch_shapes=[
                pltpu.VMEM((num_heads, td, 1), jnp.float32),      # running max
                pltpu.VMEM((num_heads, td, 1), jnp.float32),      # running denom
                acc_spec,                                         # running numerator
            ]),
        compiler_params=pltpu.CompilerParams(
            dimension_semantics=("parallel", "arbitrary"),
            vmem_limit_bytes=vmem_limit),
    )(k, q, v, adj_t, wo_p, bo_p)

    # Module forward returns (x, 0) when graph_analysis=False.
    # TODO(synk): compute_homo / graph_analysis branch is host-side scipy graph analysis,
    # not a kernel op.
    return out[:N, :dim_out], 0


def reference(x, adj, params, num_heads):
    """Pure-JAX f32 reference matching the PyTorch/DGL semantics."""
    N, dim = x.shape
    head_dim = dim // num_heads
    q = (x @ params["wq"] + params["bq"]).reshape(N, num_heads, head_dim)
    k = (x @ params["wk"] + params["bk"]).reshape(N, num_heads, head_dim)
    v = (x @ params["wv"] + params["bv"]).reshape(N, num_heads, head_dim)
    s = jnp.einsum("uhd,vhd->huv", q, k) / (head_dim ** 0.5)
    s = jnp.where(adj[None] > 0, s, -1e30)
    m = jnp.max(s, axis=1, keepdims=True)
    e = jnp.exp(s - m) * (adj[None] > 0)
    denom = jnp.sum(e, axis=1, keepdims=True)
    probs = e / jnp.where(denom > 0, denom, 1.0)                   # [H, u, v]
    out = jnp.einsum("huv,uhd->vhd", probs, v).reshape(N, dim)
    return out @ params["wo"] + params["bo"]


if __name__ == "__main__":
    N = 8          # number of graph nodes
    dim = 32       # hidden dim
    dim_out = 32
    num_heads = 4
    # dropout = 0.1 -> identity in eval mode

    key = jax.random.PRNGKey(0)
    ks = jax.random.split(key, 10)
    scale = 0.1
    params = {
        "wq": jax.random.normal(ks[0], (dim, dim), jnp.float32) * scale,
        "bq": jax.random.normal(ks[1], (1, dim), jnp.float32) * scale,
        "wk": jax.random.normal(ks[2], (dim, dim), jnp.float32) * scale,
        "bk": jax.random.normal(ks[3], (1, dim), jnp.float32) * scale,
        "wv": jax.random.normal(ks[4], (dim, dim), jnp.float32) * scale,
        "bv": jax.random.normal(ks[5], (1, dim), jnp.float32) * scale,
        "wo": jax.random.normal(ks[6], (dim, dim_out), jnp.float32) * scale,
        "bo": jax.random.normal(ks[7], (1, dim_out), jnp.float32) * scale,
    }
    x = jax.random.normal(ks[8], (N, dim), jnp.float32)

    # Deterministic graph: ring edges u -> (u+1) % N plus self-loops (every node
    # has at least one incoming edge, so edge_softmax is well defined).
    adj = jnp.zeros((N, N), jnp.float32)
    idx_u = jnp.arange(N)
    adj = adj.at[idx_u, (idx_u + 1) % N].set(1.0)
    adj = adj.at[idx_u, idx_u].set(1.0)

    out, aux = transformer_attention(x, adj, params, num_heads)
    out = jax.block_until_ready(out)

    ref = reference(x, adj, params, num_heads)
    assert out.shape == (N, dim_out)
    # Tolerance reflects bf16 storage/MXU operands and the approximate (EUP)
    # reciprocal; semantics errors would be orders larger.
    assert jnp.allclose(out, ref, atol=2e-2, rtol=2e-2), "mismatch vs reference"
    print("KERNEL_OK")
</pallas_src>

<mosaic_0001>
module attributes {stable_mosaic.version = 11 : i64} {
  func.func @qkv_proj_kernel(%arg0: i32, %arg1: memref<64x32xbf16, #tpu.memory_space<vmem>>, %arg2: memref<32x96xbf16, #tpu.memory_space<vmem>>, %arg3: memref<1x96xf32, #tpu.memory_space<vmem>>, %arg4: memref<64x32xbf16, #tpu.memory_space<vmem>>, %arg5: memref<64x32xbf16, #tpu.memory_space<vmem>>, %arg6: memref<64x32xbf16, #tpu.memory_space<vmem>>) attributes {dimension_semantics = [#tpu.dimension_semantics<parallel>], iteration_bounds = array<i64: 1>, scalar_prefetch = 0 : i64, scratch_operands = 0 : i64, tpu.core_type = #tpu.core_type<tc>, window_params = [{transform_indices = @transform_0, window_bounds = array<i64: 64, 32>}, {pipeline_mode = #tpu.pipeline_mode<synchronous>, transform_indices = @transform_1, window_bounds = array<i64: 32, 96>}, {pipeline_mode = #tpu.pipeline_mode<synchronous>, transform_indices = @transform_2, window_bounds = array<i64: 1, 96>}, {transform_indices = @transform_3, window_bounds = array<i64: 64, 32>}, {transform_indices = @transform_4, window_bounds = array<i64: 64, 32>}, {transform_indices = @transform_5, window_bounds = array<i64: 64, 32>}]} {
    %c0 = arith.constant 0 : index
    %c0_0 = arith.constant 0 : index
    %0 = vector.load %arg1[%c0, %c0_0] : memref<64x32xbf16, #tpu.memory_space<vmem>>, vector<64x32xbf16>
    %c0_1 = arith.constant 0 : index
    %c0_2 = arith.constant 0 : index
    %1 = vector.load %arg2[%c0_1, %c0_2] : memref<32x96xbf16, #tpu.memory_space<vmem>>, vector<32x96xbf16>
    %cst = arith.constant dense<0.000000e+00> : vector<64x96xf32>
    %2 = tpu.matmul %0, %1, %cst {dimension_numbers = #tpu.dot_dimension_numbers<[1], [0], [0], [1], [0, 0, 1, 1], [], []>} : vector<64x32xbf16>, vector<32x96xbf16>, vector<64x96xf32> -> vector<64x96xf32>
    %c0_3 = arith.constant 0 : index
    %c0_4 = arith.constant 0 : index
    %3 = vector.load %arg3[%c0_3, %c0_4] : memref<1x96xf32, #tpu.memory_space<vmem>>, vector<1x96xf32>
    %4 = vector.broadcast %3 : vector<1x96xf32> to vector<64x96xf32>
    %5 = arith.addf %2, %4 : vector<64x96xf32>
    %6 = vector.extract_strided_slice %5 {offsets = [0, 0], sizes = [64, 32], strides = [1, 1]} : vector<64x96xf32> to vector<64x32xf32>
    %7 = arith.truncf %6 : vector<64x32xf32> to vector<64x32xbf16>
    %c0_5 = arith.constant 0 : index
    %c0_6 = arith.constant 0 : index
    %8 = vector.load %arg4[%c0_5, %c0_6] : memref<64x32xbf16, #tpu.memory_space<vmem>>, vector<64x32xbf16>
    tpu.vector_store %arg4[%c0_5, %c0_6], %7 {strides = array<i32>} : memref<64x32xbf16, #tpu.memory_space<vmem>>, vector<64x32xbf16>,
    %9 = vector.extract_strided_slice %5 {offsets = [0, 32], sizes = [64, 32], strides = [1, 1]} : vector<64x96xf32> to vector<64x32xf32>
    %10 = arith.truncf %9 : vector<64x32xf32> to vector<64x32xbf16>
    %c0_7 = arith.constant 0 : index
    %c0_8 = arith.constant 0 : index
    %11 = vector.load %arg5[%c0_7, %c0_8] : memref<64x32xbf16, #tpu.memory_space<vmem>>, vector<64x32xbf16>
    tpu.vector_store %arg5[%c0_7, %c0_8], %10 {strides = array<i32>} : memref<64x32xbf16, #tpu.memory_space<vmem>>, vector<64x32xbf16>,
    %12 = vector.extract_strided_slice %5 {offsets = [0, 64], sizes = [64, 32], strides = [1, 1]} : vector<64x96xf32> to vector<64x32xf32>
    %13 = arith.truncf %12 : vector<64x32xf32> to vector<64x32xbf16>
    %c0_9 = arith.constant 0 : index
    %c0_10 = arith.constant 0 : index
    %14 = vector.load %arg6[%c0_9, %c0_10] : memref<64x32xbf16, #tpu.memory_space<vmem>>, vector<64x32xbf16>
    tpu.vector_store %arg6[%c0_9, %c0_10], %13 {strides = array<i32>} : memref<64x32xbf16, #tpu.memory_space<vmem>>, vector<64x32xbf16>,
    return
  }
  func.func @transform_0(%arg0: i32) -> (i32, i32) {
    %c0_i32 = arith.constant 0 : i32
    %c0_i32_0 = arith.constant 0 : i32
    return %arg0, %c0_i32 : i32, i32
  }
  func.func @transform_1(%arg0: i32) -> (i32, i32) {
    %c0_i32 = arith.constant 0 : i32
    %c0_i32_0 = arith.constant 0 : i32
    %c0_i32_1 = arith.constant 0 : i32
    return %c0_i32, %c0_i32_0 : i32, i32
  }
  func.func @transform_2(%arg0: i32) -> (i32, i32) {
    %c0_i32 = arith.constant 0 : i32
    %c0_i32_0 = arith.constant 0 : i32
    %c0_i32_1 = arith.constant 0 : i32
    return %c0_i32, %c0_i32_0 : i32, i32
  }
  func.func @transform_3(%arg0: i32) -> (i32, i32) {
    %c0_i32 = arith.constant 0 : i32
    %c0_i32_0 = arith.constant 0 : i32
    return %arg0, %c0_i32 : i32, i32
  }
  func.func @transform_4(%arg0: i32) -> (i32, i32) {
    %c0_i32 = arith.constant 0 : i32
    %c0_i32_0 = arith.constant 0 : i32
    return %arg0, %c0_i32 : i32, i32
  }
  func.func @transform_5(%arg0: i32) -> (i32, i32) {
    %c0_i32 = arith.constant 0 : i32
    %c0_i32_0 = arith.constant 0 : i32
    return %arg0, %c0_i32 : i32, i32
  }
}

</mosaic_0001>

<bundles_post_ra>
// kernel: tpu_custom_call.1
= control target key start
LH: loop header
LB: loop body
LE: loop exit
PB: predicated region body
PF: predicated region fallthrough
CT: control target
= control target key end

     0   :  { %vm69_vm0 = vcmask 261120   ;;  %vm179_vm1 = vcmask 257024   ;;  %s321_s8 = smov 96   ;;  %s322_s17 = smov 64   ;;  %s470_s1 = inlined_call_operand.vmem [shape: bf16[32,96], index: 1, kind: input, shape index: {}]   ;;  %s471_s0 = inlined_call_operand.vmem [shape: bf16[64,32], index: 0, kind: input, shape index: {}]   ;;  %s472_s2 = inlined_call_operand.vmem [shape: f32[1,96], index: 2, kind: input, shape index: {}]   ;;  %s473_s3 = inlined_call_operand.vmem [shape: bf16[64,32], index: 3, kind: output, shape index: {0}]   ;;  %s474_s4 = inlined_call_operand.vmem [shape: bf16[64,32], index: 4, kind: output, shape index: {1}]   ;;  %s475_s5 = inlined_call_operand.vmem [shape: bf16[64,32], index: 5, kind: output, shape index: {2}]  }
   0x1   :  { %v315_v0 = vld [vmem:[%s470_s1 + $0x8] sm:$0xff]   ;;  %v316_v1 = vld [vmem:[%s470_s1] sm:$0xff]   ;;  %v318_v3 = vld [vmem:[%s471_s0 + $0x10] sm:$0xff]  }
   0x2   :  { %297 = vmatprep.subr.bf16.mxu0 %v315_v0  ;;  %309 = vmatprep.subr.bf16.mxu1 %v315_v0  ;;  %v317_v2 = vld [vmem:[%s471_s0] sm:$0xff]   ;;  %v319_v4 = vld [vmem:[%s471_s0 + $0x8] sm:$0xff]   ;;  %v320_v5 = vld [vmem:[%s471_s0 + $0x18] sm:$0xff]  }
   0x3   :  { %298 = vmatpush3.bf16.msra.mxu0 %v315_v0  ;;  %311 = vmatpush3.bf16.msra.mxu1 %v315_v0  ;;  %v264_v6 = vld [vmem:[%s472_s2] ss:$0 sm:$0xff] }
   0x4   :  { %299 = vmatprep.subr.bf16.mxu0 %v316_v1  ;;  %310 = vmatprep.subr.bf16.mxu1 %v316_v1 }
   0x5   :  { %301 = vmatprep.mubr.msk.bf16.mxu0 %vm69_vm0, %v317_v2  ;;  %305 = vmatprep.mubr.msk.bf16.mxu1 %vm69_vm0, %v318_v3 }
   0x7   :  { %300 = vmatpush3.bf16.msra.mxu0 %v316_v1  ;;  %312 = vmatpush3.bf16.msra.mxu1 %v316_v1 }
   0xa   :  { %302 = vmatmul.mubr.msk.bf16.vlgmr.msra.gmra.mxu0 %vm69_vm0, %v319_v4  ;;  %306 = vmatmul.mubr.msk.bf16.vlgmr.msra.gmra.mxu1 %vm69_vm0, %v320_v5 }
  0xca   :  { %v303_v7 = vpop.f32.mrf.mxu0  ;;  %v307_v8 = vpop.f32.mrf.mxu1 }
  0xcb   :  { %v125_v9 = vadd.f32 %v303_v7, %v264_v6  ;;  %v141_v10 = vadd.f32 %v307_v8, %v264_v6 }
  0xcc   :  { %v116_v11 = vpop.f32.mrf.mxu0  ;;  %v132_v12 = vpop.f32.mrf.mxu1 }
  0xcd   :  { %v285_v13 = vpack.c.bf16 %v125_v9, %v125_v9  ;;  %v289_v14 = vpack.c.bf16 %v141_v10, %v141_v10  ;;  %v117_v15 = vadd.f32 %v264_v6, %v116_v11  ;;  %v133_v16 = vadd.f32 %v264_v6, %v132_v12 }
  0xce   :  { %v304_v17 = vpop.f32.mrf.mxu0  ;;  %v308_v18 = vpop.f32.mrf.mxu1 }
  0xcf   :  { %182 = vst.msk [vmem:[%s473_s3 + $0x8] sm:$0xf] %vm179_vm1, %v285_v13  ;;  %186 = vst.msk [vmem:[%s473_s3 + $0x18] sm:$0xf] %vm179_vm1, %v289_v14  ;;  %v283_v19 = vpack.c.bf16 %v117_v15, %v117_v15  ;;  %v287_v20 = vpack.c.bf16 %v133_v16, %v133_v16  ;;  %v128_v21 = vadd.f32 %v304_v17, %v264_v6  ;;  %200 = vrot.lane.b32.xlu0 %v289_v14, %s321_s8 }
  0xd0   :  { %v144_v22 = vadd.f32 %v308_v18, %v264_v6  ;;  %192 = vrot.lane.b32.xlu1 %v285_v13, %s321_s8  ;;  %v119_v23 = vpop.f32.mrf.mxu0  ;;  %v135_v24 = vpop.f32.mrf.mxu1 }
  0xd1   :  { %180 = vst.msk [vmem:[%s473_s3] sm:$0xf] %vm179_vm1, %v283_v19  ;;  %184 = vst.msk [vmem:[%s473_s3 + $0x10] sm:$0xf] %vm179_vm1, %v287_v20  ;;  %v286_v25 = vpack.c.bf16 %v128_v21, %v128_v21  ;;  %v120_v27 = vadd.f32 %v264_v6, %v119_v23  ;;  %v136_v28 = vadd.f32 %v264_v6, %v135_v24 }
  0xd2   :  { %v290_v26 = vpack.c.bf16 %v144_v22, %v144_v22 }
  0xd3   :  { %183 = vst.msk [vmem:[%s473_s3 + $0xc] sm:$0xf] %vm179_vm1, %v286_v25  ;;  %v284_v29 = vpack.c.bf16 %v120_v27, %v120_v27  ;;  %v288_v30 = vpack.c.bf16 %v136_v28, %v136_v28  ;;  %224 = vrot.lane.b32.xlu0 %v285_v13, %s322_s17 }
  0xd4   :  { %187 = vst.msk [vmem:[%s473_s3 + $0x1c] sm:$0xf] %vm179_vm1, %v290_v26  ;;  %194 = vrot.lane.b32.xlu1 %v286_v25, %s321_s8 }
  0xd5   :  { %181 = vst.msk [vmem:[%s473_s3 + $0x4] sm:$0xf] %vm179_vm1, %v284_v29  ;;  %185 = vst.msk [vmem:[%s473_s3 + $0x14] sm:$0xf] %vm179_vm1, %v288_v30 }
  0xd7   :  { %188 = vrot.lane.b32.xlu0 %v283_v19, %s321_s8 }
  0xd8   :  { %202 = vrot.lane.b32.xlu1 %v290_v26, %s321_s8 }
  0xdb   :  { %196 = vrot.lane.b32.xlu0 %v287_v20, %s321_s8 }
  0xdc   :  { %226 = vrot.lane.b32.xlu1 %v286_v25, %s322_s17 }
  0xdf   :  { %220 = vrot.lane.b32.xlu0 %v283_v19, %s322_s17 }
  0xe0   :  { %198 = vrot.lane.b32.xlu1 %v288_v30, %s321_s8 }
  0xe3   :  { %228 = vrot.lane.b32.xlu0 %v287_v20, %s322_s17 }
  0xe4   :  { %222 = vrot.lane.b32.xlu1 %v284_v29, %s322_s17 }
  0xe7   :  { %190 = vrot.lane.b32.xlu0 %v284_v29, %s321_s8 }
  0xe8   :  { %230 = vrot.lane.b32.xlu1 %v288_v30, %s322_s17 }
  0xeb   :  { %232 = vrot.lane.b32.xlu0 %v289_v14, %s322_s17 }
  0xec   :  { %234 = vrot.lane.b32.xlu1 %v290_v26, %s322_s17 }
 0x141   :  { %v201_v31 = vpop.permute.xlu0 %200 }
 0x142   :  { %218 = vst.msk [vmem:[%s474_s4 + $0x18] sm:$0xf] %vm179_vm1, %v201_v31  ;;  %v193_v32 = vpop.permute.xlu1 %192 }
 0x143   :  { %214 = vst.msk [vmem:[%s474_s4 + $0x8] sm:$0xf] %vm179_vm1, %v193_v32 }
 0x145   :  { %v225_v33 = vpop.permute.xlu0 %224 }
 0x146   :  { %246 = vst.msk [vmem:[%s475_s5 + $0x8] sm:$0xf] %vm179_vm1, %v225_v33  ;;  %v195_v34 = vpop.permute.xlu1 %194 }
 0x147   :  { %215 = vst.msk [vmem:[%s474_s4 + $0xc] sm:$0xf] %vm179_vm1, %v195_v34 }
 0x149   :  { %v189_v35 = vpop.permute.xlu0 %188 }
 0x14a   :  { %v203_v36 = vpop.permute.xlu1 %202  ;;  %212 = vst.msk [vmem:[%s474_s4] sm:$0xf] %vm179_vm1, %v189_v35 }
 0x14b   :  { %219 = vst.msk [vmem:[%s474_s4 + $0x1c] sm:$0xf] %vm179_vm1, %v203_v36 }
 0x14d   :  { %v197_v37 = vpop.permute.xlu0 %196 }
 0x14e   :  { %v227_v38 = vpop.permute.xlu1 %226  ;;  %216 = vst.msk [vmem:[%s474_s4 + $0x10] sm:$0xf] %vm179_vm1, %v197_v37 }
 0x14f   :  { %247 = vst.msk [vmem:[%s475_s5 + $0xc] sm:$0xf] %vm179_vm1, %v227_v38 }
 0x151   :  { %v221_v39 = vpop.permute.xlu0 %220 }
 0x152   :  { %v199_v40 = vpop.permute.xlu1 %198  ;;  %244 = vst.msk [vmem:[%s475_s5] sm:$0xf] %vm179_vm1, %v221_v39 }
 0x153   :  { %217 = vst.msk [vmem:[%s474_s4 + $0x14] sm:$0xf] %vm179_vm1, %v199_v40 }
 0x155   :  { %v229_v41 = vpop.permute.xlu0 %228 }
 0x156   :  { %v223_v42 = vpop.permute.xlu1 %222  ;;  %248 = vst.msk [vmem:[%s475_s5 + $0x10] sm:$0xf] %vm179_vm1, %v229_v41 }
 0x157   :  { %245 = vst.msk [vmem:[%s475_s5 + $0x4] sm:$0xf] %vm179_vm1, %v223_v42 }
 0x159   :  { %v191_v43 = vpop.permute.xlu0 %190 }
 0x15a   :  { %v231_v44 = vpop.permute.xlu1 %230  ;;  %213 = vst.msk [vmem:[%s474_s4 + $0x4] sm:$0xf] %vm179_vm1, %v191_v43 }
 0x15b   :  { %249 = vst.msk [vmem:[%s475_s5 + $0x14] sm:$0xf] %vm179_vm1, %v231_v44 }
 0x15d   :  { %v233_v45 = vpop.permute.xlu0 %232 }
 0x15e   :  { %v235_v46 = vpop.permute.xlu1 %234  ;;  %250 = vst.msk [vmem:[%s475_s5 + $0x18] sm:$0xf] %vm179_vm1, %v233_v45 }
 0x15f   :  { %251 = vst.msk [vmem:[%s475_s5 + $0x1c] sm:$0xf] %vm179_vm1, %v235_v46 }

</bundles_post_ra>
